<compile_context>
chip_gen: v7x
topology: tpu7x:2x2x1
jax: 0.10.0
libtpu: 0.0.40
codegen_flags: <defaults>
</compile_context>

<pallas_src>
import jax
import jax.numpy as jnp
from jax.experimental import pallas as pl
from jax.experimental.pallas import tpu as pltpu


def _mlp_kernel(xT_ref, w1_ref, b1_ref, w2_ref, b2_ref, o_ref):
    # xT: (D_in, TB)  w1: (H, D_in)  b1: (H, 1)  w2: (H, 1)  b2: (1,) in SMEM
    # o : (1, TB)   -- batch on lanes everywhere (lane-dense output store).

    # ---- linear1 + ReLU (MXU matmul, f32 accumulate) ----------------------
    h = jnp.dot(w1_ref[...], xT_ref[...],
                preferred_element_type=jnp.float32)          # (H, TB)
    h = jnp.maximum(h + b1_ref[...], 0.0)                    # VPU

    # ---- linear2 (out_features == 1): VPU multiply + XLU sublane reduce ---
    # Avoids a near-empty (N=1) MXU matmul and its push/pop bubble.
    z = jnp.sum(h * w2_ref[...], axis=0, keepdims=True) + b2_ref[0]   # (1, TB)

    # ---- sigmoid: EUP exp + exact reciprocal ------------------------------
    # Exact divide keeps the result within float32 rounding of the reference
    # (the approx reciprocal previously cost ~2e-3 of error).  The divide only
    # touches a (1, TB) slab, so it is not a bottleneck.
    sig = 1.0 / (1.0 + jnp.exp(-z))
    o_ref[...] = sig.astype(o_ref.dtype)


def neural_net_forward(x, w1, b1, w2, b2, *, block_b=128):
    """Forward pass matching PyTorch NeuralNet.forward.

    x : (B, D_in) float32
    w1: (H, D_in)  -- PyTorch nn.Linear weight layout (out_features, in_features)
    b1: (H,)
    w2: (1, H)
    b2: (1,)
    returns (B, 1) float32
    """
    B, D_in = x.shape
    H = w1.shape[0]

    # Pad the batch to a tile multiple and lay it out batch-minor so the batch
    # axis maps to lanes inside the kernel (layout plumbing, done once by XLA).
    n_tiles = pl.cdiv(B, block_b)
    B_pad = n_tiles * block_b
    xT = jnp.zeros((D_in, B_pad), x.dtype).at[:, :B].set(x.T)

    b1_col = b1.reshape(H, 1).astype(jnp.float32)
    w2_col = w2.reshape(H, 1).astype(jnp.float32)   # (1,H) -> (H,1) column
    b2_s = b2.reshape(1).astype(jnp.float32)

    vmem = pltpu.MemorySpace.VMEM
    smem = pltpu.MemorySpace.SMEM

    out_t = pl.pallas_call(
        _mlp_kernel,
        out_shape=jax.ShapeDtypeStruct((1, B_pad), jnp.float32),
        grid_spec=pl.GridSpec(
            grid=(n_tiles,),
            in_specs=[
                # Streamed activations: one batch tile per grid step
                # (default pipeline double-buffers this block).
                pl.BlockSpec((D_in, block_b), lambda i: (0, i),
                             memory_space=vmem),
                # Parameters: block index never changes -> DMA'd once and kept
                # VMEM-resident across the whole grid.
                pl.BlockSpec((H, D_in), lambda i: (0, 0), memory_space=vmem),
                pl.BlockSpec((H, 1), lambda i: (0, 0), memory_space=vmem),
                pl.BlockSpec((H, 1), lambda i: (0, 0), memory_space=vmem),
                # Scalar output bias lives in SMEM.
                pl.BlockSpec(memory_space=smem),
            ],
            out_specs=pl.BlockSpec((1, block_b), lambda i: (0, i),
                                   memory_space=vmem),
        ),
        compiler_params=pltpu.CompilerParams(
            # Batch tiles are fully independent -> shard across TensorCores.
            dimension_semantics=("parallel",),
        ),
    )(xT, w1.astype(jnp.float32), b1_col, w2_col, b2_s)

    return out_t[0, :B].reshape(B, 1)


if __name__ == "__main__":
    # Small feature sizes consistent with the module; batch large enough to
    # exercise the tiled (grid=(4,)) pipeline: 512 = 4 tiles of 128 lanes.
    B, D_in, H = 512, 16, 32

    key = jax.random.PRNGKey(0)
    kx, kw1, kb1, kw2, kb2 = jax.random.split(key, 5)

    x = jax.random.normal(kx, (B, D_in), dtype=jnp.float32)

    # Deterministic parameter init (Kaiming-uniform-like, as nn.Linear), in
    # native PyTorch weight layout (out_features, in_features).
    bound1 = 1.0 / jnp.sqrt(D_in)
    w1 = jax.random.uniform(kw1, (H, D_in), jnp.float32, -bound1, bound1)
    b1 = jax.random.uniform(kb1, (H,), jnp.float32, -bound1, bound1)

    bound2 = 1.0 / jnp.sqrt(H)
    w2 = jax.random.uniform(kw2, (1, H), jnp.float32, -bound2, bound2)
    b2 = jax.random.uniform(kb2, (1,), jnp.float32, -bound2, bound2)

    out = jax.block_until_ready(neural_net_forward(x, w1, b1, w2, b2))

    # Pure-JAX reference (PyTorch semantics: x @ W.T + b).
    ref = jax.nn.sigmoid(jnp.maximum(x @ w1.T + b1, 0.0) @ w2.T + b2)

    assert out.shape == (B, 1)
    err = float(jnp.max(jnp.abs(out - ref)))
    assert jnp.allclose(out, ref, atol=1e-5, rtol=1e-5), err

    print("KERNEL_OK")
</pallas_src>

<mosaic_0001>
module attributes {stable_mosaic.version = 11 : i64} {
  func.func @_mlp_kernel(%arg0: i32, %arg1: memref<16x128xf32, #tpu.memory_space<vmem>>, %arg2: memref<32x16xf32, #tpu.memory_space<vmem>>, %arg3: memref<32x1xf32, #tpu.memory_space<vmem>>, %arg4: memref<32x1xf32, #tpu.memory_space<vmem>>, %arg5: memref<1xf32, #tpu.memory_space<smem>>, %arg6: memref<1x128xf32, #tpu.memory_space<vmem>>) attributes {dimension_semantics = [#tpu.dimension_semantics<parallel>], iteration_bounds = array<i64: 4>, scalar_prefetch = 0 : i64, scratch_operands = 0 : i64, tpu.core_type = #tpu.core_type<tc>, window_params = [{transform_indices = @transform_0, window_bounds = array<i64: 16, 128>}, {pipeline_mode = #tpu.pipeline_mode<synchronous>, transform_indices = @transform_1, window_bounds = array<i64: 32, 16>}, {pipeline_mode = #tpu.pipeline_mode<synchronous>, transform_indices = @transform_2, window_bounds = array<i64: 32, 1>}, {pipeline_mode = #tpu.pipeline_mode<synchronous>, transform_indices = @transform_3, window_bounds = array<i64: 32, 1>}, {transform_indices = @transform_4, window_bounds = array<i64: 1>}, {transform_indices = @transform_5, window_bounds = array<i64: 1, 128>}]} {
    %c0 = arith.constant 0 : index
    %c0_0 = arith.constant 0 : index
    %0 = vector.load %arg2[%c0, %c0_0] : memref<32x16xf32, #tpu.memory_space<vmem>>, vector<32x16xf32>
    %c0_1 = arith.constant 0 : index
    %c0_2 = arith.constant 0 : index
    %1 = vector.load %arg1[%c0_1, %c0_2] : memref<16x128xf32, #tpu.memory_space<vmem>>, vector<16x128xf32>
    %cst = arith.constant dense<0.000000e+00> : vector<32x128xf32>
    %2 = tpu.matmul %0, %1, %cst {dimension_numbers = #tpu.dot_dimension_numbers<[1], [0], [0], [1], [0, 0, 1, 1], [], []>} : vector<32x16xf32>, vector<16x128xf32>, vector<32x128xf32> -> vector<32x128xf32>
    %c0_3 = arith.constant 0 : index
    %c0_4 = arith.constant 0 : index
    %3 = vector.load %arg3[%c0_3, %c0_4] : memref<32x1xf32, #tpu.memory_space<vmem>>, vector<32x1xf32>
    %4 = vector.broadcast %3 : vector<32x1xf32> to vector<32x128xf32>
    %5 = arith.addf %2, %4 : vector<32x128xf32>
    %cst_5 = arith.constant 0.000000e+00 : f32
    %6 = vector.broadcast %cst_5 : f32 to vector<32x128xf32>
    %7 = arith.maximumf %5, %6 : vector<32x128xf32>
    %c0_6 = arith.constant 0 : index
    %c0_7 = arith.constant 0 : index
    %8 = vector.load %arg4[%c0_6, %c0_7] : memref<32x1xf32, #tpu.memory_space<vmem>>, vector<32x1xf32>
    %9 = vector.broadcast %8 : vector<32x1xf32> to vector<32x128xf32>
    %10 = arith.mulf %7, %9 : vector<32x128xf32>
    %cst_8 = arith.constant dense<0.000000e+00> : vector<128xf32>
    %11 = vector.multi_reduction <add>, %10, %cst_8 [0] : vector<32x128xf32> to vector<128xf32>
    %12 = vector.shape_cast %11 : vector<128xf32> to vector<1x128xf32>
    %c0_9 = arith.constant 0 : index
    %13 = memref.load %arg5[%c0_9] : memref<1xf32, #tpu.memory_space<smem>>
    %14 = vector.broadcast %13 : f32 to vector<1x128xf32>
    %15 = arith.addf %12, %14 : vector<1x128xf32>
    %cst_10 = arith.constant 0.000000e+00 : f32
    %16 = vector.broadcast %cst_10 : f32 to vector<1x128xf32>
    %17 = arith.subf %16, %15 : vector<1x128xf32>
    %18 = math.exp %17 : vector<1x128xf32>
    %cst_11 = arith.constant 1.000000e+00 : f32
    %19 = vector.broadcast %cst_11 : f32 to vector<1x128xf32>
    %20 = arith.addf %19, %18 : vector<1x128xf32>
    %cst_12 = arith.constant 1.000000e+00 : f32
    %21 = vector.broadcast %cst_12 : f32 to vector<1x128xf32>
    %22 = arith.divf %21, %20 : vector<1x128xf32>
    %c0_13 = arith.constant 0 : index
    %c0_14 = arith.constant 0 : index
    %23 = vector.load %arg6[%c0_13, %c0_14] : memref<1x128xf32, #tpu.memory_space<vmem>>, vector<1x128xf32>
    tpu.vector_store %arg6[%c0_13, %c0_14], %22 {strides = array<i32>} : memref<1x128xf32, #tpu.memory_space<vmem>>, vector<1x128xf32>,
    return
  }
  func.func @transform_0(%arg0: i32) -> (i32, i32) {
    %c0_i32 = arith.constant 0 : i32
    %c0_i32_0 = arith.constant 0 : i32
    return %c0_i32, %arg0 : i32, i32
  }
  func.func @transform_1(%arg0: i32) -> (i32, i32) {
    %c0_i32 = arith.constant 0 : i32
    %c0_i32_0 = arith.constant 0 : i32
    %c0_i32_1 = arith.constant 0 : i32
    return %c0_i32, %c0_i32_0 : i32, i32
  }
  func.func @transform_2(%arg0: i32) -> (i32, i32) {
    %c0_i32 = arith.constant 0 : i32
    %c0_i32_0 = arith.constant 0 : i32
    %c0_i32_1 = arith.constant 0 : i32
    return %c0_i32, %c0_i32_0 : i32, i32
  }
  func.func @transform_3(%arg0: i32) -> (i32, i32) {
    %c0_i32 = arith.constant 0 : i32
    %c0_i32_0 = arith.constant 0 : i32
    %c0_i32_1 = arith.constant 0 : i32
    return %c0_i32, %c0_i32_0 : i32, i32
  }
  func.func @transform_4(%arg0: i32) -> i32 {
    %c0_i32 = arith.constant 0 : i32
    %c0_i32_0 = arith.constant 0 : i32
    return %c0_i32 : i32
  }
  func.func @transform_5(%arg0: i32) -> (i32, i32) {
    %c0_i32 = arith.constant 0 : i32
    %c0_i32_0 = arith.constant 0 : i32
    return %c0_i32, %arg0 : i32, i32
  }
}

</mosaic_0001>

<bundles_post_ra>
// kernel: tpu_custom_call.1
= control target key start
LH: loop header
LB: loop body
LE: loop exit
PB: predicated region body
PF: predicated region fallthrough
CT: control target
= control target key end

     0   :  { %s842_s0 = inlined_call_operand.vmem [shape: f32[16,512], index: 0, kind: input, shape index: {}]   ;;  %s843_s1 = inlined_call_operand.vmem [shape: f32[32,16], index: 1, kind: input, shape index: {}]   ;;  %s844_s2 = inlined_call_operand.vmem [shape: f32[32,1], index: 2, kind: input, shape index: {}]   ;;  %s845_s3 = inlined_call_operand.vmem [shape: f32[32,1], index: 3, kind: input, shape index: {}]   ;;  %s846_s4 = inlined_call_operand.<no memory space> [shape: f32[1], index: 4, kind: input, shape index: {}]   ;;  %s847_s5 = inlined_call_operand.hbm [shape: f32[1,512], index: 5, kind: output, shape index: {}]  }
   0x1   :  { %10 = sst [smem:[#allocation2]] %s846_s4 }
   0x2   :  { %11 = vsyncpa [#allocation5], 0 }
   0x3   :  { %13 = vsyncpa [#allocation5 + $0x1], 0  ;;  %s695_s20 = smov 0   ;;  %s697_s21 = smov 0  }
   0x4   :  { %s699_s22 = smov 0   ;;  %s701_s23 = smov 0  }
   0x5 LB: > { %s513_s4 = sadd.s32 4294967295, %s658_s23   ;;  %s514_s24 = sadd.s32 4294967294, %s658_s23   ;;  %s658_s23 = sphi %s701_s23, %s853_s23   ;;  %s654_s22 = sphi %s699_s22, %s852_s22   ;;  %s650_s21 = sphi %s697_s21, %s851_s21   ;;  %s646_s20 = sphi %s695_s20, %s850_s20  }
   0x6   : > { %s718_s25 = sadd.s32 1, %s658_s23   ;;  %s26_s26 = sadd.s32 1, %s654_s22 }
   0x7   : > { %s23_s27 = ssub.s32 %s658_s23, %s718_s25  ;;  %p33_p0 = scmp.ne.s32.totalorder %s654_s22, %s650_s21 }
   0x8   : > { %p24_p1 = scmp.eq.s32.totalorder %s23_s27, 0  ;;  %p34_p2 = scmp.eq.s32.totalorder %s658_s23, 0 }
   0x9   : > { %p147_p3 = scmp.eq.s32.totalorder %s513_s4, 3  ;;  %p152_p4 = scmp.ne.s32.totalorder %s650_s21, %s646_s20 }
   0xa   : > { %s731_s28 = scalar_select %p24_p1, %s654_s22, %s26_s26  }
   0xb   : > { %p35_p5 = por %p34_p2, %p33_p0  ;;  %p733_p6 = por %p147_p3, %p33_p0 }
   0xc   : > { %p153_p7 = scmp.eq.s32.totalorder %s514_s24, 3  ;;  %p516_p9 = scmp.ge.s32.totalorder %s658_s23, 4 }
   0xe   : > { %p737_p8 = por %p153_p7, %p152_p4  ;;  %181 = sbr.rel (%p516_p9) target bundleno = 28 (0x1c), region = 32 }
  0x15   : > { %184 = sbr.rel (!%p35_p5) target bundleno = 28 (0x1c), region = 36  ;;  %s186_s6 = sand.u32 (%p35_p5), 1, %s654_s22  }
  0x16   : > { %s518_s7 = sshll.u32 (%p35_p5), %s658_s23, 3  ;;  %s517_s8 = sshll.u32 (%p35_p5), %s186_s6, 4 }
  0x17   : > { %s190_s11 = scalar_lea.vmem (%p35_p5), %s842_s0, %s518_s7  ;;  %s188_s12 = scalar_lea.vmem (%p35_p5), [#allocation3], %s517_s8 }
  0x18   : > { %v220_v0 = vld [vmem:[%s190_s11] sm:$0xff] (%p35_p5) }
  0x19   : > { %v222_v1 = vld [vmem:[%s190_s11 + $0x20] sm:$0xff] (%p35_p5)  ;;  %221 = vst [vmem:[%s188_s12] sm:$0xff] (%p35_p5), %v220_v0 }
  0x1a   : > { %223 = vst [vmem:[%s188_s12 + $0x8] sm:$0xff] (%p35_p5), %v222_v1 }
  0x1c PF: > { %p519_p10 = scmp.ge.s32.totalorder %s658_s23, 1  ;;  %p228_p11 = scmp.lt.s32.totalorder %s658_s23, 5 }
  0x1e   : > { %p229_p12 = pnand %p519_p10, %p228_p11 }
  0x1f   : > { %s750_s13 = sand.u32 (!%p229_p12), 1, %s650_s21   ;;  %v261_v2 = vld [vmem:[%s843_s1] sm:$0xff] (!%p229_p12)  ;;  %vm291_vm0 = vcmask (!%p229_p12), 130048   ;;  %v263_v3 = vld [vmem:[%s843_s1 + $0x10] sm:$0xff] (!%p229_p12)  ;;  %v660_v6 = vmov (!%p229_p12), 0   ;;  %v268_v10 = vld [vmem:[%s844_s2 + $0x8] sm:$0xff] (!%p229_p12) }
  0x20   : > { %232 = sbr.rel (%p229_p12) target bundleno = 322 (0x142), region = 74  ;;  %s520_s18 = sshll.u32 (!%p229_p12), %s750_s13, 4  ;;  %538 = vmatprep.mubr.msk.f32.mxu0 (!%p229_p12), %vm291_vm0, %v261_v2  ;;  %541 = vmatprep.mubr.msk.f32.mxu1 (!%p229_p12), %vm291_vm0, %v263_v3  ;;  %v267_v4 = vld [vmem:[%s844_s2] sm:$0xff] (!%p229_p12)  ;;  %v269_v5 = vld [vmem:[%s844_s2 + $0x10] sm:$0xff] (!%p229_p12)  ;;  %v270_v11 = vld [vmem:[%s844_s2 + $0x18] sm:$0xff] (!%p229_p12) }
  0x21   : > { %590 = vset.pattern.permute.xlu0 (!%p229_p12), %v660_v6  ;;  %591 = vset.pattern.permute.xlu1 (!%p229_p12), %v660_v6  ;;  %s237_s6 = scalar_lea.vmem (!%p229_p12), [#allocation3], %s520_s18  ;;  %v262_v12 = vld [vmem:[%s843_s1 + $0x8] sm:$0xff] (!%p229_p12)  ;;  %v264_v13 = vld [vmem:[%s843_s1 + $0x18] sm:$0xff] (!%p229_p12)  ;;  %v393_v14 = vld [vmem:[%s845_s3] sm:$0xff] (!%p229_p12)  ;;  %s430_s7 = sld [smem:[#allocation2]] (!%p229_p12) }
  0x22   : > { %v265_v7 = vld [vmem:[%s237_s6] sm:$0xff] (!%p229_p12)  ;;  %v266_v8 = vld [vmem:[%s237_s6 + $0x8] sm:$0xff] (!%p229_p12)  ;;  %273 = vperm.xlu0 (!%p229_p12), %590, %v267_v4   ;;  %283 = vperm.xlu1 (!%p229_p12), %591, %v269_v5   ;;  %s525_s8 = sshll.u32 (!%p229_p12), %s513_s4, 4  ;;  %s260_s9 = scalar_lea.vmem (!%p229_p12), [#allocation4], %s750_s13 }
  0x23   : > { %v544_v9 = vpack.c.bf16 (!%p229_p12), %v266_v8, %v265_v7  ;;  %v394_v15 = vld [vmem:[%s845_s3 + $0x8] sm:$0xff] (!%p229_p12)  ;;  %v395_v16 = vld [vmem:[%s845_s3 + $0x10] sm:$0xff] (!%p229_p12)  ;;  %v396_v17 = vld [vmem:[%s845_s3 + $0x18] sm:$0xff] (!%p229_p12)  ;;  %s453_s10 = sshll.u32 (!%p229_p12), %s260_s9, 4  ;;  %s799_s14 = scalar_lea.hbm (!%p229_p12), %s847_s5, %s525_s8  ;;  %s801_s10 = int_to_ptr.vmem [resolvable:$true] %s453_s10 }
  0x24   : > { %s441_s15 = scalar_lea.sflag (!%p229_p12), [#allocation5], %s750_s13  ;;  %s596_s16 = scalar_lea.vmem (!%p229_p12), %s801_s10, 16 }
  0x25   : > { %545 = vmatprep.subr.bf16.mxu0 (!%p229_p12), %v544_v9  ;;  %548 = vmatprep.subr.bf16.mxu1 (!%p229_p12), %v544_v9  ;;  %p597_p13 = scmp.ne.s32.totalorder (!%p229_p12), %s801_s10, %s596_s16  ;;  %s661_s4 = smov (!%p229_p12), [#allocation4]  }
  0x26   : > { %547 = vmatpush3.bf16.msra.mxu0 (!%p229_p12), %v544_v9  ;;  %549 = vmatpush3.bf16.msra.mxu1 (!%p229_p12), %v544_v9  ;;  %s600_s17 = sshll.u32 (!%p229_p12), %s661_s4, 4  ;;  %s601_s17 = int_to_ptr.vmem [resolvable:$false] %s600_s17 }
  0x27   : > { %278 = vperm.xlu0 %590, %v268_v10   ;;  %288 = vperm.xlu1 %591, %v270_v11   ;;  %v431_v50 = vstv %s430_s7  ;;  %p598_p0 = pnand %p597_p13, %p733_p6  ;;  %s602_s18 = scalar_lea.vmem %s601_s17, 32 }
  0x28   : > { %p603_p2 = scmp.lt.s32.totalorder %s801_s10, %s601_s17  ;;  %p604_p3 = scmp.lt.s32.totalorder %s602_s18, %s596_s16 }
  0x29   : > { %539 = vmatmul.mubr.msk.f32.vlgmr.msra.gmra.mrb[0].mxu0 %vm291_vm0, %v262_v12  ;;  %542 = vmatmul.mubr.msk.f32.vlgmr.msra.gmra.mrb[0].mxu1 %vm291_vm0, %v264_v13  ;;  %p599_p1 = pneg %p598_p0 }
  0x2a   : > { %p605_p4 = por %p604_p3, %p603_p2 }
  0x2b   : > { %399 = vperm.xlu0 %590, %v393_v14   ;;  %404 = vperm.xlu1 %591, %v394_v15  }
  0x2c   : > { %p606_p5 = pnand %p605_p4, %p599_p1 }
  0x2f   : > { %409 = vperm.xlu0 %590, %v395_v16   ;;  %414 = vperm.xlu1 %591, %v396_v17  }
  0xa1   : > { %v274_v18 = vpop.permute.xlu0 %273  ;;  %v284_v19 = vpop.permute.xlu1 %283 }
  0xa6   : > { %v279_v20 = vpop.permute.xlu0 %278  ;;  %v289_v21 = vpop.permute.xlu1 %288 }
  0xaa   : > { %v400_v22 = vpop.permute.xlu0 %399  ;;  %v405_v31 = vpop.permute.xlu1 %404 }
  0xae   : > { %v410_v38 = vpop.permute.xlu0 %409  ;;  %v415_v41 = vpop.permute.xlu1 %414 }
  0xfc   : > { %v540_v23 = vpop.f32.mrb[0].mxu0  ;;  %v543_v24 = vpop.f32.mrb[0].mxu1 }
  0xfd   : > { %v376_v25 = vadd.f32 %v540_v23, %v279_v20  ;;  %v370_v26 = vpop.f32.mrb[1].mxu0  ;;  %v380_v27 = vpop.f32.mrb[1].mxu1  ;;  %v386_v28 = vadd.f32 %v543_v24, %v289_v21 }
  0xfe   : > { %v371_v29 = vadd.f32 %v370_v26, %v274_v18  ;;  %v381_v30 = vadd.f32 %v380_v27, %v284_v19 }
  0xff   : > { %v390_v32 = vmax.f32 %v376_v25, 0.0  ;;  %v392_v36 = vmax.f32 %v386_v28, 0.0 }
 0x100   : > { %v389_v33 = vmax.f32 %v371_v29, 0.0  ;;  %v391_v34 = vmax.f32 %v381_v30, 0.0 }
 0x101   : > { %v418_v35 = vmul.f32 %v405_v31, %v390_v32  ;;  %v420_v42 = vmul.f32 %v415_v41, %v392_v36 }
 0x102   : > { %v417_v37 = vmul.f32 %v400_v22, %v389_v33  ;;  %v419_v40 = vmul.f32 %v410_v38, %v391_v34 }
 0x104   : > { %v421_v39 = vadd.f32 %v418_v35, %v417_v37 }
 0x106   : > { %v422_v43 = vadd.f32 %v421_v39, %v419_v40 }
 0x108   : > { %v423_v44 = vadd.f32 %v422_v43, %v420_v42 }
 0x10a   : > { %v424_v45 = vrot.slane %v423_v44, 4 }
 0x10c   : > { %v425_v46 = vadd.f32 %v424_v45, %v423_v44 }
 0x10e   : > { %v426_v47 = vrot.slane %v425_v46, 2 }
 0x110   : > { %v427_v48 = vadd.f32 %v426_v47, %v425_v46 }
 0x112   : > { %v428_v49 = vrot.slane %v427_v48, 1 }
 0x114   : > { %v429_v51 = vadd.f32 %v428_v49, %v427_v48 }
 0x116   : > { %v432_v52 = vadd.f32 %v431_v50, %v429_v51 }
 0x118   : > { %v433_v53 = vsub.f32 0.0, %v432_v52 }
 0x11a   : > { %v434_v54 = vmul.f32 1.442695, %v433_v53 }
 0x11c   : > { %592 = vpow2.f32 %v434_v54 }
 0x126   : > { %v593_v55 = vpop.eup %592 }
 0x127   : > { %v436_v56 = vadd.f32 1.0, %v593_v55 }
 0x129   : > { %594 = vrcp.f32 %v436_v56 }
 0x133   : > { %v595_v57 = vpop.eup %594 }
 0x134   : > { %439 = vst [vmem:[%s260_s9] sm:$0x1] %v595_v57 }
 0x135   : > { %609 = shalt.err (!%p606_p5)
}
 0x136   : > { %s610_s13 = scalar_lea.hbm %s799_s14, 16  ;;  %s614_s26 = scalar_lea.hbm %s847_s5, 64 }
 0x137   : > { %p611_p7 = scmp.ne.s32.totalorder %s799_s14, %s610_s13  ;;  %p615_p11 = scmp.lt.u32.totalorder %s799_s14, %s847_s5 }
 0x138   : > { %p616_p12 = scmp.lt.u32.totalorder %s614_s26, %s610_s13  ;;  %p618_p0 = scmp.lt.u32.totalorder %s610_s13, %s799_s14 }
 0x139   : > { %p612_p9 = pnand %p611_p7, %p733_p6 }
 0x13a   : > { %p617_p13 = por %p616_p12, %p615_p11 }
 0x13b   : > { %p613_p10 = pneg %p612_p9 }
 0x13c   : > { %p619_p1 = por %p618_p0, %p617_p13 }
 0x13e   : > { %p620_p2 = pnand %p619_p1, %p613_p10 }
 0x140   : > { %623 = shalt.err (!%p620_p2)
}
 0x141   : > { %550 = dma.vmem_to_hbm [thread:$0]  (%p733_p6), %s801_s10, 16, %s799_s14, %s441_s15  }
 0x142 PF: > { %p556_p3 = scmp.ge.s32.totalorder %s658_s23, 2  ;;  %s465_s7 = sand.u32 1, %s646_s20  }
 0x143   : > { %s466_s8 = scalar_lea.sflag [#allocation5], %s465_s7 }
 0x144   : > { %p553_p4 = pnand %p556_p3, %p737_p8 }
 0x146   : > { %641 = dma.done.wait (!%p553_p4), %s466_s8, 16  }
 0x147   : > { %643 = vsyncadd (!%p553_p4), %s466_s8, 4294967280  ;;  %p16_p5 = scmp.ge.s32.totalorder %s718_s25, 6   ;;  %s850_s20 = smov %s650_s21 }
 0x148   : > { %s851_s21 = smov %s654_s22  ;;  %s852_s22 = smov %s731_s28 }
 0x149   : > { %s853_s23 = smov %s718_s25  ;;  %18 = sbr.rel (!%p16_p5) target bundleno = 5 (0x5), region = 118 }
 0x150   :  { %470 = vsyncpa [#allocation5], 1 }
 0x151   :  { %472 = vsyncpa [#allocation5 + $0x1], 1 }

</bundles_post_ra>
